<compile_context>
chip_gen: v7x
topology: tpu7x:2x2x1
jax: 0.10.0
libtpu: 0.0.40
codegen_flags: <defaults>
</compile_context>

<pallas_src>
import functools

import jax
import jax.numpy as jnp
from jax import lax
from jax.experimental import pallas as pl
from jax.experimental.pallas import tpu as pltpu


# ------------------------------ fused kernel --------------------------------
def _fused_attn_kernel(q_ref, k_ref, v_ref, mask_ref,
                       wq_ref, wk_ref, wv_ref, wo_ref, b_ref,
                       o_ref, *, batch, heads, head_dim, q_len, k_len):
    # q_ref (N*Q, E), k_ref/v_ref (N*K, E), mask_ref (N*Q, K) of {0,1}
    # wq/wk/wv (E, E) block-diag of W^T (scale folded into Wq), wo (E, E)=W_out^T
    embed = heads * head_dim

    # Batched projections over all N*L rows: one (N*L,E)@(E,E) matmul each.
    qp = jnp.dot(q_ref[...], wq_ref[...], preferred_element_type=jnp.float32)
    kp = jnp.dot(k_ref[...], wk_ref[...], preferred_element_type=jnp.float32)
    vp = jnp.dot(v_ref[...], wv_ref[...], preferred_element_type=jnp.float32)

    # {0,1} mask -> additive bias (0 / -1e30); avoids (-inf)-(-inf) NaN.
    bias_all = jnp.where(mask_ref[...] == 0, jnp.float32(-1e30), jnp.float32(0.0))

    b_out = b_ref[...]  # (1, E)

    # batch x head statically unrolled (N=2, H=4); fc_out fused into the loop:
    #   concat_h(o_h) @ W_out^T == sum_h o_h @ W_out^T[h*d:(h+1)*d, :]
    for n in range(batch):
        q_lo = n * q_len
        k_lo = n * k_len
        bias = bias_all[q_lo:q_lo + q_len, :]                    # (Q, K)
        acc = jnp.zeros((q_len, embed), jnp.float32)
        for h in range(heads):
            lo = h * head_dim
            hi = lo + head_dim
            qh = qp[q_lo:q_lo + q_len, lo:hi]                    # (Q, d)
            kh = kp[k_lo:k_lo + k_len, lo:hi]                    # (K, d)
            vh = vp[k_lo:k_lo + k_len, lo:hi]                    # (K, d)
            # contract last dim of both operands -> no in-kernel transpose
            s = lax.dot_general(qh, kh, (((1,), (1,)), ((), ())),
                                preferred_element_type=jnp.float32) + bias  # (Q,K)
            s_max = jnp.max(s, axis=-1, keepdims=True)
            p = jnp.exp(s - s_max)
            l = jnp.sum(p, axis=-1, keepdims=True)               # (Q, 1)
            o_h = jnp.dot(p, vh, preferred_element_type=jnp.float32)        # (Q, d)
            # normalize after PV: (Q,d) multiply instead of (Q,K)
            o_h = o_h * pl.reciprocal(l, approx=False)
            acc = acc + jnp.dot(o_h, wo_ref[lo:hi, :],
                                preferred_element_type=jnp.float32)         # (Q, E)
        o_ref[q_lo:q_lo + q_len, :] = acc + b_out
    # TODO(synk): at realistic E, pad E to a multiple of 128 (or emit a
    # flattened lane-dense slab) so the store is unmasked vst.


# --------------------------------- wrapper -----------------------------------
def masked_self_attention(values, keys, query, mask, params, *, embed_size, heads):
    """values/keys/query: (N, L, embed_size) f32; mask: (N, Q, K) of {0,1}."""
    head_dim = embed_size // heads
    N, q_len, _ = query.shape
    k_len = keys.shape[1]
    assert values.shape[1] == k_len

    scale = float(embed_size / heads) ** -0.5   # 1/sqrt(head_dim), matches module

    # host-side (free) parameter prep: block-diagonal W^T so each per-head
    # Linear becomes one (N*L,E)@(E,E) matmul; softmax scale folded into Wq.
    eye_h = jnp.eye(heads, dtype=jnp.float32)
    wq_bd = jnp.kron(eye_h, params["wq"].T) * jnp.float32(scale)   # (E, E)
    wk_bd = jnp.kron(eye_h, params["wk"].T)                        # (E, E)
    wv_bd = jnp.kron(eye_h, params["wv"].T)                        # (E, E)
    wo_t = params["w_out"].T                                       # (E, E)
    b_out = params["b_out"]                                        # (1, E)

    # flatten batch into rows so the whole problem is one grid step
    q2 = query.reshape(N * q_len, embed_size)
    k2 = keys.reshape(N * k_len, embed_size)
    v2 = values.reshape(N * k_len, embed_size)
    m2 = mask.astype(jnp.float32).reshape(N * q_len, k_len)

    out2 = pl.pallas_call(
        functools.partial(_fused_attn_kernel, batch=N, heads=heads,
                          head_dim=head_dim, q_len=q_len, k_len=k_len),
        out_shape=jax.ShapeDtypeStruct((N * q_len, embed_size), jnp.float32),
        grid_spec=pltpu.PrefetchScalarGridSpec(
            num_scalar_prefetch=0,
            grid=(1,),   # single step: everything resident in VMEM
            in_specs=[
                pl.BlockSpec((N * q_len, embed_size), lambda i: (0, 0)),
                pl.BlockSpec((N * k_len, embed_size), lambda i: (0, 0)),
                pl.BlockSpec((N * k_len, embed_size), lambda i: (0, 0)),
                pl.BlockSpec((N * q_len, k_len), lambda i: (0, 0)),
                pl.BlockSpec((embed_size, embed_size), lambda i: (0, 0)),
                pl.BlockSpec((embed_size, embed_size), lambda i: (0, 0)),
                pl.BlockSpec((embed_size, embed_size), lambda i: (0, 0)),
                pl.BlockSpec((embed_size, embed_size), lambda i: (0, 0)),
                pl.BlockSpec((1, embed_size), lambda i: (0, 0)),
            ],
            out_specs=pl.BlockSpec((N * q_len, embed_size), lambda i: (0, 0)),
        ),
        compiler_params=pltpu.CompilerParams(
            dimension_semantics=("arbitrary",)),
    )(q2, k2, v2, m2, wq_bd, wk_bd, wv_bd, wo_t, b_out)

    return out2.reshape(N, q_len, embed_size)


# ------------------------------ pure-JAX reference ---------------------------
def _reference(values, keys, query, mask, params, *, embed_size, heads):
    head_dim = embed_size // heads
    N, q_len, _ = query.shape
    k_len = keys.shape[1]
    v = values.reshape(N, k_len, heads, head_dim) @ params["wv"].T
    k = keys.reshape(N, k_len, heads, head_dim) @ params["wk"].T
    q = query.reshape(N, q_len, heads, head_dim) @ params["wq"].T
    scores = jnp.einsum("nqhd,nkhd->nhqk", q, k) / jnp.sqrt(
        jnp.float32(embed_size / heads))
    scores = jnp.where(mask[:, None, :, :] == 0, -jnp.inf, scores)
    attn = jax.nn.softmax(scores, axis=-1)
    out = jnp.einsum("nhqk,nkhd->nqhd", attn, v).reshape(N, q_len, embed_size)
    return out @ params["w_out"].T + params["b_out"][0]


# ----------------------------------- main ------------------------------------
if __name__ == "__main__":
    embed_size, heads = 32, 4
    head_dim = embed_size // heads
    N, seq = 2, 8

    key = jax.random.PRNGKey(0)
    ks = jax.random.split(key, 8)

    # deterministic parameter init (shapes per nn.Module __init__)
    params = {
        "wq": jax.random.normal(ks[0], (head_dim, head_dim), jnp.float32) * 0.1,
        "wk": jax.random.normal(ks[1], (head_dim, head_dim), jnp.float32) * 0.1,
        "wv": jax.random.normal(ks[2], (head_dim, head_dim), jnp.float32) * 0.1,
        "w_out": jax.random.normal(ks[3], (embed_size, embed_size), jnp.float32) * 0.1,
        "b_out": jax.random.normal(ks[4], (1, embed_size), jnp.float32) * 0.1,
    }

    values = jax.random.normal(ks[5], (N, seq, embed_size), jnp.float32)
    keys_in = jax.random.normal(ks[6], (N, seq, embed_size), jnp.float32)
    query = jax.random.normal(ks[7], (N, seq, embed_size), jnp.float32)

    # causal mask (N, Q, K); broadcast over heads, matches torch mask==0 fill
    mask = jnp.tril(jnp.ones((seq, seq), jnp.float32))[None].repeat(N, axis=0)

    out = masked_self_attention(
        values, keys_in, query, mask, params, embed_size=embed_size, heads=heads
    )
    out = jax.block_until_ready(out)

    ref = _reference(
        values, keys_in, query, mask, params, embed_size=embed_size, heads=heads
    )
    assert jnp.allclose(out, ref, atol=1e-4, rtol=1e-4), "mismatch vs reference"

    print("KERNEL_OK")
</pallas_src>

<mosaic_0001>
module attributes {stable_mosaic.version = 11 : i64} {
  func.func @_fused_attn_kernel(%arg0: i32, %arg1: memref<16x32xf32, #tpu.memory_space<vmem>>, %arg2: memref<16x32xf32, #tpu.memory_space<vmem>>, %arg3: memref<16x32xf32, #tpu.memory_space<vmem>>, %arg4: memref<16x8xf32, #tpu.memory_space<vmem>>, %arg5: memref<32x32xf32, #tpu.memory_space<vmem>>, %arg6: memref<32x32xf32, #tpu.memory_space<vmem>>, %arg7: memref<32x32xf32, #tpu.memory_space<vmem>>, %arg8: memref<32x32xf32, #tpu.memory_space<vmem>>, %arg9: memref<1x32xf32, #tpu.memory_space<vmem>>, %arg10: memref<16x32xf32, #tpu.memory_space<vmem>>) attributes {dimension_semantics = [#tpu.dimension_semantics<arbitrary>], iteration_bounds = array<i64: 1>, scalar_prefetch = 0 : i64, scratch_operands = 0 : i64, tpu.core_type = #tpu.core_type<tc>, window_params = [{pipeline_mode = #tpu.pipeline_mode<synchronous>, transform_indices = @transform_0, window_bounds = array<i64: 16, 32>}, {pipeline_mode = #tpu.pipeline_mode<synchronous>, transform_indices = @transform_1, window_bounds = array<i64: 16, 32>}, {pipeline_mode = #tpu.pipeline_mode<synchronous>, transform_indices = @transform_2, window_bounds = array<i64: 16, 32>}, {pipeline_mode = #tpu.pipeline_mode<synchronous>, transform_indices = @transform_3, window_bounds = array<i64: 16, 8>}, {pipeline_mode = #tpu.pipeline_mode<synchronous>, transform_indices = @transform_4, window_bounds = array<i64: 32, 32>}, {pipeline_mode = #tpu.pipeline_mode<synchronous>, transform_indices = @transform_5, window_bounds = array<i64: 32, 32>}, {pipeline_mode = #tpu.pipeline_mode<synchronous>, transform_indices = @transform_6, window_bounds = array<i64: 32, 32>}, {pipeline_mode = #tpu.pipeline_mode<synchronous>, transform_indices = @transform_7, window_bounds = array<i64: 32, 32>}, {pipeline_mode = #tpu.pipeline_mode<synchronous>, transform_indices = @transform_8, window_bounds = array<i64: 1, 32>}, {pipeline_mode = #tpu.pipeline_mode<synchronous>, transform_indices = @transform_9, window_bounds = array<i64: 16, 32>}]} {
    %c0 = arith.constant 0 : index
    %c0_0 = arith.constant 0 : index
    %0 = vector.load %arg1[%c0, %c0_0] : memref<16x32xf32, #tpu.memory_space<vmem>>, vector<16x32xf32>
    %c0_1 = arith.constant 0 : index
    %c0_2 = arith.constant 0 : index
    %1 = vector.load %arg5[%c0_1, %c0_2] : memref<32x32xf32, #tpu.memory_space<vmem>>, vector<32x32xf32>
    %cst = arith.constant dense<0.000000e+00> : vector<16x32xf32>
    %2 = tpu.matmul %0, %1, %cst {dimension_numbers = #tpu.dot_dimension_numbers<[1], [0], [0], [1], [0, 0, 1, 1], [], []>} : vector<16x32xf32>, vector<32x32xf32>, vector<16x32xf32> -> vector<16x32xf32>
    %c0_3 = arith.constant 0 : index
    %c0_4 = arith.constant 0 : index
    %3 = vector.load %arg2[%c0_3, %c0_4] : memref<16x32xf32, #tpu.memory_space<vmem>>, vector<16x32xf32>
    %c0_5 = arith.constant 0 : index
    %c0_6 = arith.constant 0 : index
    %4 = vector.load %arg6[%c0_5, %c0_6] : memref<32x32xf32, #tpu.memory_space<vmem>>, vector<32x32xf32>
    %cst_7 = arith.constant dense<0.000000e+00> : vector<16x32xf32>
    %5 = tpu.matmul %3, %4, %cst_7 {dimension_numbers = #tpu.dot_dimension_numbers<[1], [0], [0], [1], [0, 0, 1, 1], [], []>} : vector<16x32xf32>, vector<32x32xf32>, vector<16x32xf32> -> vector<16x32xf32>
    %c0_8 = arith.constant 0 : index
    %c0_9 = arith.constant 0 : index
    %6 = vector.load %arg3[%c0_8, %c0_9] : memref<16x32xf32, #tpu.memory_space<vmem>>, vector<16x32xf32>
    %c0_10 = arith.constant 0 : index
    %c0_11 = arith.constant 0 : index
    %7 = vector.load %arg7[%c0_10, %c0_11] : memref<32x32xf32, #tpu.memory_space<vmem>>, vector<32x32xf32>
    %cst_12 = arith.constant dense<0.000000e+00> : vector<16x32xf32>
    %8 = tpu.matmul %6, %7, %cst_12 {dimension_numbers = #tpu.dot_dimension_numbers<[1], [0], [0], [1], [0, 0, 1, 1], [], []>} : vector<16x32xf32>, vector<32x32xf32>, vector<16x32xf32> -> vector<16x32xf32>
    %c0_13 = arith.constant 0 : index
    %c0_14 = arith.constant 0 : index
    %9 = vector.load %arg4[%c0_13, %c0_14] : memref<16x8xf32, #tpu.memory_space<vmem>>, vector<16x8xf32>
    %cst_15 = arith.constant 0.000000e+00 : f32
    %10 = vector.broadcast %cst_15 : f32 to vector<16x8xf32>
    %11 = arith.cmpf oeq, %9, %10 : vector<16x8xf32>
    %cst_16 = arith.constant -1.000000e+30 : f32
    %cst_17 = arith.constant 0.000000e+00 : f32
    %12 = vector.broadcast %cst_16 : f32 to vector<16x8xf32>
    %13 = vector.broadcast %cst_17 : f32 to vector<16x8xf32>
    %14 = arith.select %11, %12, %13 : vector<16x8xi1>, vector<16x8xf32>
    %c0_18 = arith.constant 0 : index
    %c0_19 = arith.constant 0 : index
    %15 = vector.load %arg9[%c0_18, %c0_19] : memref<1x32xf32, #tpu.memory_space<vmem>>, vector<1x32xf32>
    %16 = vector.extract_strided_slice %14 {offsets = [0, 0], sizes = [8, 8], strides = [1, 1]} : vector<16x8xf32> to vector<8x8xf32>
    %cst_20 = arith.constant 0.000000e+00 : f32
    %17 = vector.broadcast %cst_20 : f32 to vector<8x32xf32>
    %18 = vector.extract_strided_slice %2 {offsets = [0, 0], sizes = [8, 8], strides = [1, 1]} : vector<16x32xf32> to vector<8x8xf32>
    %19 = vector.extract_strided_slice %5 {offsets = [0, 0], sizes = [8, 8], strides = [1, 1]} : vector<16x32xf32> to vector<8x8xf32>
    %20 = vector.extract_strided_slice %8 {offsets = [0, 0], sizes = [8, 8], strides = [1, 1]} : vector<16x32xf32> to vector<8x8xf32>
    %cst_21 = arith.constant dense<0.000000e+00> : vector<8x8xf32>
    %21 = tpu.matmul %18, %19, %cst_21 {dimension_numbers = #tpu.dot_dimension_numbers<[1], [1], [0], [0], [0, 0, 1, 0], [], []>} : vector<8x8xf32>, vector<8x8xf32>, vector<8x8xf32> -> vector<8x8xf32>
    %22 = arith.addf %21, %16 : vector<8x8xf32>
    %cst_22 = arith.constant dense<0xFF800000> : vector<8xf32>
    %23 = vector.multi_reduction <maximumf>, %22, %cst_22 [1] : vector<8x8xf32> to vector<8xf32>
    %24 = vector.shape_cast %23 : vector<8xf32> to vector<8x1xf32>
    %25 = vector.broadcast %24 : vector<8x1xf32> to vector<8x8xf32>
    %26 = arith.subf %22, %25 : vector<8x8xf32>
    %27 = math.exp %26 : vector<8x8xf32>
    %cst_23 = arith.constant dense<0.000000e+00> : vector<8xf32>
    %28 = vector.multi_reduction <add>, %27, %cst_23 [1] : vector<8x8xf32> to vector<8xf32>
    %29 = vector.shape_cast %28 : vector<8xf32> to vector<8x1xf32>
    %cst_24 = arith.constant dense<0.000000e+00> : vector<8x8xf32>
    %30 = tpu.matmul %27, %20, %cst_24 {dimension_numbers = #tpu.dot_dimension_numbers<[1], [0], [0], [1], [0, 0, 1, 1], [], []>} : vector<8x8xf32>, vector<8x8xf32>, vector<8x8xf32> -> vector<8x8xf32>
    %31 = tpu.reciprocal %29 : vector<8x1xf32> -> vector<8x1xf32>
    %32 = vector.broadcast %31 : vector<8x1xf32> to vector<8x8xf32>
    %33 = arith.mulf %30, %32 : vector<8x8xf32>
    %c0_25 = arith.constant 0 : index
    %c0_26 = arith.constant 0 : index
    %34 = vector.load %arg8[%c0_25, %c0_26] : memref<32x32xf32, #tpu.memory_space<vmem>>, vector<8x32xf32>
    %cst_27 = arith.constant dense<0.000000e+00> : vector<8x32xf32>
    %35 = tpu.matmul %33, %34, %cst_27 {dimension_numbers = #tpu.dot_dimension_numbers<[1], [0], [0], [1], [0, 0, 1, 1], [], []>} : vector<8x8xf32>, vector<8x32xf32>, vector<8x32xf32> -> vector<8x32xf32>
    %36 = arith.addf %17, %35 : vector<8x32xf32>
    %37 = vector.extract_strided_slice %2 {offsets = [0, 8], sizes = [8, 8], strides = [1, 1]} : vector<16x32xf32> to vector<8x8xf32>
    %38 = vector.extract_strided_slice %5 {offsets = [0, 8], sizes = [8, 8], strides = [1, 1]} : vector<16x32xf32> to vector<8x8xf32>
    %39 = vector.extract_strided_slice %8 {offsets = [0, 8], sizes = [8, 8], strides = [1, 1]} : vector<16x32xf32> to vector<8x8xf32>
    %cst_28 = arith.constant dense<0.000000e+00> : vector<8x8xf32>
    %40 = tpu.matmul %37, %38, %cst_28 {dimension_numbers = #tpu.dot_dimension_numbers<[1], [1], [0], [0], [0, 0, 1, 0], [], []>} : vector<8x8xf32>, vector<8x8xf32>, vector<8x8xf32> -> vector<8x8xf32>
    %41 = arith.addf %40, %16 : vector<8x8xf32>
    %cst_29 = arith.constant dense<0xFF800000> : vector<8xf32>
    %42 = vector.multi_reduction <maximumf>, %41, %cst_29 [1] : vector<8x8xf32> to vector<8xf32>
    %43 = vector.shape_cast %42 : vector<8xf32> to vector<8x1xf32>
    %44 = vector.broadcast %43 : vector<8x1xf32> to vector<8x8xf32>
    %45 = arith.subf %41, %44 : vector<8x8xf32>
    %46 = math.exp %45 : vector<8x8xf32>
    %cst_30 = arith.constant dense<0.000000e+00> : vector<8xf32>
    %47 = vector.multi_reduction <add>, %46, %cst_30 [1] : vector<8x8xf32> to vector<8xf32>
    %48 = vector.shape_cast %47 : vector<8xf32> to vector<8x1xf32>
    %cst_31 = arith.constant dense<0.000000e+00> : vector<8x8xf32>
    %49 = tpu.matmul %46, %39, %cst_31 {dimension_numbers = #tpu.dot_dimension_numbers<[1], [0], [0], [1], [0, 0, 1, 1], [], []>} : vector<8x8xf32>, vector<8x8xf32>, vector<8x8xf32> -> vector<8x8xf32>
    %50 = tpu.reciprocal %48 : vector<8x1xf32> -> vector<8x1xf32>
    %51 = vector.broadcast %50 : vector<8x1xf32> to vector<8x8xf32>
    %52 = arith.mulf %49, %51 : vector<8x8xf32>
    %c8 = arith.constant 8 : index
    %c0_32 = arith.constant 0 : index
    %53 = vector.load %arg8[%c8, %c0_32] : memref<32x32xf32, #tpu.memory_space<vmem>>, vector<8x32xf32>
    %cst_33 = arith.constant dense<0.000000e+00> : vector<8x32xf32>
    %54 = tpu.matmul %52, %53, %cst_33 {dimension_numbers = #tpu.dot_dimension_numbers<[1], [0], [0], [1], [0, 0, 1, 1], [], []>} : vector<8x8xf32>, vector<8x32xf32>, vector<8x32xf32> -> vector<8x32xf32>
    %55 = arith.addf %36, %54 : vector<8x32xf32>
    %56 = vector.extract_strided_slice %2 {offsets = [0, 16], sizes = [8, 8], strides = [1, 1]} : vector<16x32xf32> to vector<8x8xf32>
    %57 = vector.extract_strided_slice %5 {offsets = [0, 16], sizes = [8, 8], strides = [1, 1]} : vector<16x32xf32> to vector<8x8xf32>
    %58 = vector.extract_strided_slice %8 {offsets = [0, 16], sizes = [8, 8], strides = [1, 1]} : vector<16x32xf32> to vector<8x8xf32>
    %cst_34 = arith.constant dense<0.000000e+00> : vector<8x8xf32>
    %59 = tpu.matmul %56, %57, %cst_34 {dimension_numbers = #tpu.dot_dimension_numbers<[1], [1], [0], [0], [0, 0, 1, 0], [], []>} : vector<8x8xf32>, vector<8x8xf32>, vector<8x8xf32> -> vector<8x8xf32>
    %60 = arith.addf %59, %16 : vector<8x8xf32>
    %cst_35 = arith.constant dense<0xFF800000> : vector<8xf32>
    %61 = vector.multi_reduction <maximumf>, %60, %cst_35 [1] : vector<8x8xf32> to vector<8xf32>
    %62 = vector.shape_cast %61 : vector<8xf32> to vector<8x1xf32>
    %63 = vector.broadcast %62 : vector<8x1xf32> to vector<8x8xf32>
    %64 = arith.subf %60, %63 : vector<8x8xf32>
    %65 = math.exp %64 : vector<8x8xf32>
    %cst_36 = arith.constant dense<0.000000e+00> : vector<8xf32>
    %66 = vector.multi_reduction <add>, %65, %cst_36 [1] : vector<8x8xf32> to vector<8xf32>
    %67 = vector.shape_cast %66 : vector<8xf32> to vector<8x1xf32>
    %cst_37 = arith.constant dense<0.000000e+00> : vector<8x8xf32>
    %68 = tpu.matmul %65, %58, %cst_37 {dimension_numbers = #tpu.dot_dimension_numbers<[1], [0], [0], [1], [0, 0, 1, 1], [], []>} : vector<8x8xf32>, vector<8x8xf32>, vector<8x8xf32> -> vector<8x8xf32>
    %69 = tpu.reciprocal %67 : vector<8x1xf32> -> vector<8x1xf32>
    %70 = vector.broadcast %69 : vector<8x1xf32> to vector<8x8xf32>
    %71 = arith.mulf %68, %70 : vector<8x8xf32>
    %c16 = arith.constant 16 : index
    %c0_38 = arith.constant 0 : index
    %72 = vector.load %arg8[%c16, %c0_38] : memref<32x32xf32, #tpu.memory_space<vmem>>, vector<8x32xf32>
    %cst_39 = arith.constant dense<0.000000e+00> : vector<8x32xf32>
    %73 = tpu.matmul %71, %72, %cst_39 {dimension_numbers = #tpu.dot_dimension_numbers<[1], [0], [0], [1], [0, 0, 1, 1], [], []>} : vector<8x8xf32>, vector<8x32xf32>, vector<8x32xf32> -> vector<8x32xf32>
    %74 = arith.addf %55, %73 : vector<8x32xf32>
    %75 = vector.extract_strided_slice %2 {offsets = [0, 24], sizes = [8, 8], strides = [1, 1]} : vector<16x32xf32> to vector<8x8xf32>
    %76 = vector.extract_strided_slice %5 {offsets = [0, 24], sizes = [8, 8], strides = [1, 1]} : vector<16x32xf32> to vector<8x8xf32>
    %77 = vector.extract_strided_slice %8 {offsets = [0, 24], sizes = [8, 8], strides = [1, 1]} : vector<16x32xf32> to vector<8x8xf32>
    %cst_40 = arith.constant dense<0.000000e+00> : vector<8x8xf32>
    %78 = tpu.matmul %75, %76, %cst_40 {dimension_numbers = #tpu.dot_dimension_numbers<[1], [1], [0], [0], [0, 0, 1, 0], [], []>} : vector<8x8xf32>, vector<8x8xf32>, vector<8x8xf32> -> vector<8x8xf32>
    %79 = arith.addf %78, %16 : vector<8x8xf32>
    %cst_41 = arith.constant dense<0xFF800000> : vector<8xf32>
    %80 = vector.multi_reduction <maximumf>, %79, %cst_41 [1] : vector<8x8xf32> to vector<8xf32>
    %81 = vector.shape_cast %80 : vector<8xf32> to vector<8x1xf32>
    %82 = vector.broadcast %81 : vector<8x1xf32> to vector<8x8xf32>
    %83 = arith.subf %79, %82 : vector<8x8xf32>
    %84 = math.exp %83 : vector<8x8xf32>
    %cst_42 = arith.constant dense<0.000000e+00> : vector<8xf32>
    %85 = vector.multi_reduction <add>, %84, %cst_42 [1] : vector<8x8xf32> to vector<8xf32>
    %86 = vector.shape_cast %85 : vector<8xf32> to vector<8x1xf32>
    %cst_43 = arith.constant dense<0.000000e+00> : vector<8x8xf32>
    %87 = tpu.matmul %84, %77, %cst_43 {dimension_numbers = #tpu.dot_dimension_numbers<[1], [0], [0], [1], [0, 0, 1, 1], [], []>} : vector<8x8xf32>, vector<8x8xf32>, vector<8x8xf32> -> vector<8x8xf32>
    %88 = tpu.reciprocal %86 : vector<8x1xf32> -> vector<8x1xf32>
    %89 = vector.broadcast %88 : vector<8x1xf32> to vector<8x8xf32>
    %90 = arith.mulf %87, %89 : vector<8x8xf32>
    %c24 = arith.constant 24 : index
    %c0_44 = arith.constant 0 : index
    %91 = vector.load %arg8[%c24, %c0_44] : memref<32x32xf32, #tpu.memory_space<vmem>>, vector<8x32xf32>
    %cst_45 = arith.constant dense<0.000000e+00> : vector<8x32xf32>
    %92 = tpu.matmul %90, %91, %cst_45 {dimension_numbers = #tpu.dot_dimension_numbers<[1], [0], [0], [1], [0, 0, 1, 1], [], []>} : vector<8x8xf32>, vector<8x32xf32>, vector<8x32xf32> -> vector<8x32xf32>
    %93 = arith.addf %74, %92 : vector<8x32xf32>
    %94 = vector.broadcast %15 : vector<1x32xf32> to vector<8x32xf32>
    %95 = arith.addf %93, %94 : vector<8x32xf32>
    %c0_46 = arith.constant 0 : index
    %c0_47 = arith.constant 0 : index
    %96 = vector.load %arg10[%c0_46, %c0_47] : memref<16x32xf32, #tpu.memory_space<vmem>>, vector<8x32xf32>
    tpu.vector_store %arg10[%c0_46, %c0_47], %95 {strides = array<i32>} : memref<16x32xf32, #tpu.memory_space<vmem>>, vector<8x32xf32>,
    %97 = vector.extract_strided_slice %14 {offsets = [8, 0], sizes = [8, 8], strides = [1, 1]} : vector<16x8xf32> to vector<8x8xf32>
    %cst_48 = arith.constant 0.000000e+00 : f32
    %98 = vector.broadcast %cst_48 : f32 to vector<8x32xf32>
    %99 = vector.extract_strided_slice %2 {offsets = [8, 0], sizes = [8, 8], strides = [1, 1]} : vector<16x32xf32> to vector<8x8xf32>
    %100 = vector.extract_strided_slice %5 {offsets = [8, 0], sizes = [8, 8], strides = [1, 1]} : vector<16x32xf32> to vector<8x8xf32>
    %101 = vector.extract_strided_slice %8 {offsets = [8, 0], sizes = [8, 8], strides = [1, 1]} : vector<16x32xf32> to vector<8x8xf32>
    %cst_49 = arith.constant dense<0.000000e+00> : vector<8x8xf32>
    %102 = tpu.matmul %99, %100, %cst_49 {dimension_numbers = #tpu.dot_dimension_numbers<[1], [1], [0], [0], [0, 0, 1, 0], [], []>} : vector<8x8xf32>, vector<8x8xf32>, vector<8x8xf32> -> vector<8x8xf32>
    %103 = arith.addf %102, %97 : vector<8x8xf32>
    %cst_50 = arith.constant dense<0xFF800000> : vector<8xf32>
    %104 = vector.multi_reduction <maximumf>, %103, %cst_50 [1] : vector<8x8xf32> to vector<8xf32>
    %105 = vector.shape_cast %104 : vector<8xf32> to vector<8x1xf32>
    %106 = vector.broadcast %105 : vector<8x1xf32> to vector<8x8xf32>
    %107 = arith.subf %103, %106 : vector<8x8xf32>
    %108 = math.exp %107 : vector<8x8xf32>
    %cst_51 = arith.constant dense<0.000000e+00> : vector<8xf32>
    %109 = vector.multi_reduction <add>, %108, %cst_51 [1] : vector<8x8xf32> to vector<8xf32>
    %110 = vector.shape_cast %109 : vector<8xf32> to vector<8x1xf32>
    %cst_52 = arith.constant dense<0.000000e+00> : vector<8x8xf32>
    %111 = tpu.matmul %108, %101, %cst_52 {dimension_numbers = #tpu.dot_dimension_numbers<[1], [0], [0], [1], [0, 0, 1, 1], [], []>} : vector<8x8xf32>, vector<8x8xf32>, vector<8x8xf32> -> vector<8x8xf32>
    %112 = tpu.reciprocal %110 : vector<8x1xf32> -> vector<8x1xf32>
    %113 = vector.broadcast %112 : vector<8x1xf32> to vector<8x8xf32>
    %114 = arith.mulf %111, %113 : vector<8x8xf32>
    %c0_53 = arith.constant 0 : index
    %c0_54 = arith.constant 0 : index
    %115 = vector.load %arg8[%c0_53, %c0_54] : memref<32x32xf32, #tpu.memory_space<vmem>>, vector<8x32xf32>
    %cst_55 = arith.constant dense<0.000000e+00> : vector<8x32xf32>
    %116 = tpu.matmul %114, %115, %cst_55 {dimension_numbers = #tpu.dot_dimension_numbers<[1], [0], [0], [1], [0, 0, 1, 1], [], []>} : vector<8x8xf32>, vector<8x32xf32>, vector<8x32xf32> -> vector<8x32xf32>
    %117 = arith.addf %98, %116 : vector<8x32xf32>
    %118 = vector.extract_strided_slice %2 {offsets = [8, 8], sizes = [8, 8], strides = [1, 1]} : vector<16x32xf32> to vector<8x8xf32>
    %119 = vector.extract_strided_slice %5 {offsets = [8, 8], sizes = [8, 8], strides = [1, 1]} : vector<16x32xf32> to vector<8x8xf32>
    %120 = vector.extract_strided_slice %8 {offsets = [8, 8], sizes = [8, 8], strides = [1, 1]} : vector<16x32xf32> to vector<8x8xf32>
    %cst_56 = arith.constant dense<0.000000e+00> : vector<8x8xf32>
    %121 = tpu.matmul %118, %119, %cst_56 {dimension_numbers = #tpu.dot_dimension_numbers<[1], [1], [0], [0], [0, 0, 1, 0], [], []>} : vector<8x8xf32>, vector<8x8xf32>, vector<8x8xf32> -> vector<8x8xf32>
    %122 = arith.addf %121, %97 : vector<8x8xf32>
    %cst_57 = arith.constant dense<0xFF800000> : vector<8xf32>
    %123 = vector.multi_reduction <maximumf>, %122, %cst_57 [1] : vector<8x8xf32> to vector<8xf32>
    %124 = vector.shape_cast %123 : vector<8xf32> to vector<8x1xf32>
    %125 = vector.broadcast %124 : vector<8x1xf32> to vector<8x8xf32>
    %126 = arith.subf %122, %125 : vector<8x8xf32>
    %127 = math.exp %126 : vector<8x8xf32>
    %cst_58 = arith.constant dense<0.000000e+00> : vector<8xf32>
    %128 = vector.multi_reduction <add>, %127, %cst_58 [1] : vector<8x8xf32> to vector<8xf32>
    %129 = vector.shape_cast %128 : vector<8xf32> to vector<8x1xf32>
    %cst_59 = arith.constant dense<0.000000e+00> : vector<8x8xf32>
    %130 = tpu.matmul %127, %120, %cst_59 {dimension_numbers = #tpu.dot_dimension_numbers<[1], [0], [0], [1], [0, 0, 1, 1], [], []>} : vector<8x8xf32>, vector<8x8xf32>, vector<8x8xf32> -> vector<8x8xf32>
    %131 = tpu.reciprocal %129 : vector<8x1xf32> -> vector<8x1xf32>
    %132 = vector.broadcast %131 : vector<8x1xf32> to vector<8x8xf32>
    %133 = arith.mulf %130, %132 : vector<8x8xf32>
    %c8_60 = arith.constant 8 : index
    %c0_61 = arith.constant 0 : index
    %134 = vector.load %arg8[%c8_60, %c0_61] : memref<32x32xf32, #tpu.memory_space<vmem>>, vector<8x32xf32>
    %cst_62 = arith.constant dense<0.000000e+00> : vector<8x32xf32>
    %135 = tpu.matmul %133, %134, %cst_62 {dimension_numbers = #tpu.dot_dimension_numbers<[1], [0], [0], [1], [0, 0, 1, 1], [], []>} : vector<8x8xf32>, vector<8x32xf32>, vector<8x32xf32> -> vector<8x32xf32>
    %136 = arith.addf %117, %135 : vector<8x32xf32>
    %137 = vector.extract_strided_slice %2 {offsets = [8, 16], sizes = [8, 8], strides = [1, 1]} : vector<16x32xf32> to vector<8x8xf32>
    %138 = vector.extract_strided_slice %5 {offsets = [8, 16], sizes = [8, 8], strides = [1, 1]} : vector<16x32xf32> to vector<8x8xf32>
    %139 = vector.extract_strided_slice %8 {offsets = [8, 16], sizes = [8, 8], strides = [1, 1]} : vector<16x32xf32> to vector<8x8xf32>
    %cst_63 = arith.constant dense<0.000000e+00> : vector<8x8xf32>
    %140 = tpu.matmul %137, %138, %cst_63 {dimension_numbers = #tpu.dot_dimension_numbers<[1], [1], [0], [0], [0, 0, 1, 0], [], []>} : vector<8x8xf32>, vector<8x8xf32>, vector<8x8xf32> -> vector<8x8xf32>
    %141 = arith.addf %140, %97 : vector<8x8xf32>
    %cst_64 = arith.constant dense<0xFF800000> : vector<8xf32>
    %142 = vector.multi_reduction <maximumf>, %141, %cst_64 [1] : vector<8x8xf32> to vector<8xf32>
    %143 = vector.shape_cast %142 : vector<8xf32> to vector<8x1xf32>
    %144 = vector.broadcast %143 : vector<8x1xf32> to vector<8x8xf32>
    %145 = arith.subf %141, %144 : vector<8x8xf32>
    %146 = math.exp %145 : vector<8x8xf32>
    %cst_65 = arith.constant dense<0.000000e+00> : vector<8xf32>
    %147 = vector.multi_reduction <add>, %146, %cst_65 [1] : vector<8x8xf32> to vector<8xf32>
    %148 = vector.shape_cast %147 : vector<8xf32> to vector<8x1xf32>
    %cst_66 = arith.constant dense<0.000000e+00> : vector<8x8xf32>
    %149 = tpu.matmul %146, %139, %cst_66 {dimension_numbers = #tpu.dot_dimension_numbers<[1], [0], [0], [1], [0, 0, 1, 1], [], []>} : vector<8x8xf32>, vector<8x8xf32>, vector<8x8xf32> -> vector<8x8xf32>
    %150 = tpu.reciprocal %148 : vector<8x1xf32> -> vector<8x1xf32>
    %151 = vector.broadcast %150 : vector<8x1xf32> to vector<8x8xf32>
    %152 = arith.mulf %149, %151 : vector<8x8xf32>
    %c16_67 = arith.constant 16 : index
    %c0_68 = arith.constant 0 : index
    %153 = vector.load %arg8[%c16_67, %c0_68] : memref<32x32xf32, #tpu.memory_space<vmem>>, vector<8x32xf32>
    %cst_69 = arith.constant dense<0.000000e+00> : vector<8x32xf32>
    %154 = tpu.matmul %152, %153, %cst_69 {dimension_numbers = #tpu.dot_dimension_numbers<[1], [0], [0], [1], [0, 0, 1, 1], [], []>} : vector<8x8xf32>, vector<8x32xf32>, vector<8x32xf32> -> vector<8x32xf32>
    %155 = arith.addf %136, %154 : vector<8x32xf32>
    %156 = vector.extract_strided_slice %2 {offsets = [8, 24], sizes = [8, 8], strides = [1, 1]} : vector<16x32xf32> to vector<8x8xf32>
    %157 = vector.extract_strided_slice %5 {offsets = [8, 24], sizes = [8, 8], strides = [1, 1]} : vector<16x32xf32> to vector<8x8xf32>
    %158 = vector.extract_strided_slice %8 {offsets = [8, 24], sizes = [8, 8], strides = [1, 1]} : vector<16x32xf32> to vector<8x8xf32>
    %cst_70 = arith.constant dense<0.000000e+00> : vector<8x8xf32>
    %159 = tpu.matmul %156, %157, %cst_70 {dimension_numbers = #tpu.dot_dimension_numbers<[1], [1], [0], [0], [0, 0, 1, 0], [], []>} : vector<8x8xf32>, vector<8x8xf32>, vector<8x8xf32> -> vector<8x8xf32>
    %160 = arith.addf %159, %97 : vector<8x8xf32>
    %cst_71 = arith.constant dense<0xFF800000> : vector<8xf32>
    %161 = vector.multi_reduction <maximumf>, %160, %cst_71 [1] : vector<8x8xf32> to vector<8xf32>
    %162 = vector.shape_cast %161 : vector<8xf32> to vector<8x1xf32>
    %163 = vector.broadcast %162 : vector<8x1xf32> to vector<8x8xf32>
    %164 = arith.subf %160, %163 : vector<8x8xf32>
    %165 = math.exp %164 : vector<8x8xf32>
    %cst_72 = arith.constant dense<0.000000e+00> : vector<8xf32>
    %166 = vector.multi_reduction <add>, %165, %cst_72 [1] : vector<8x8xf32> to vector<8xf32>
    %167 = vector.shape_cast %166 : vector<8xf32> to vector<8x1xf32>
    %cst_73 = arith.constant dense<0.000000e+00> : vector<8x8xf32>
    %168 = tpu.matmul %165, %158, %cst_73 {dimension_numbers = #tpu.dot_dimension_numbers<[1], [0], [0], [1], [0, 0, 1, 1], [], []>} : vector<8x8xf32>, vector<8x8xf32>, vector<8x8xf32> -> vector<8x8xf32>
    %169 = tpu.reciprocal %167 : vector<8x1xf32> -> vector<8x1xf32>
    %170 = vector.broadcast %169 : vector<8x1xf32> to vector<8x8xf32>
    %171 = arith.mulf %168, %170 : vector<8x8xf32>
    %c24_74 = arith.constant 24 : index
    %c0_75 = arith.constant 0 : index
    %172 = vector.load %arg8[%c24_74, %c0_75] : memref<32x32xf32, #tpu.memory_space<vmem>>, vector<8x32xf32>
    %cst_76 = arith.constant dense<0.000000e+00> : vector<8x32xf32>
    %173 = tpu.matmul %171, %172, %cst_76 {dimension_numbers = #tpu.dot_dimension_numbers<[1], [0], [0], [1], [0, 0, 1, 1], [], []>} : vector<8x8xf32>, vector<8x32xf32>, vector<8x32xf32> -> vector<8x32xf32>
    %174 = arith.addf %155, %173 : vector<8x32xf32>
    %175 = vector.broadcast %15 : vector<1x32xf32> to vector<8x32xf32>
    %176 = arith.addf %174, %175 : vector<8x32xf32>
    %c8_77 = arith.constant 8 : index
    %c0_78 = arith.constant 0 : index
    %177 = vector.load %arg10[%c8_77, %c0_78] : memref<16x32xf32, #tpu.memory_space<vmem>>, vector<8x32xf32>
    tpu.vector_store %arg10[%c8_77, %c0_78], %176 {strides = array<i32>} : memref<16x32xf32, #tpu.memory_space<vmem>>, vector<8x32xf32>,
    return
  }
  func.func @transform_0(%arg0: i32) -> (i32, i32) {
    %c0_i32 = arith.constant 0 : i32
    %c0_i32_0 = arith.constant 0 : i32
    %c0_i32_1 = arith.constant 0 : i32
    return %c0_i32, %c0_i32_0 : i32, i32
  }
  func.func @transform_1(%arg0: i32) -> (i32, i32) {
    %c0_i32 = arith.constant 0 : i32
    %c0_i32_0 = arith.constant 0 : i32
    %c0_i32_1 = arith.constant 0 : i32
    return %c0_i32, %c0_i32_0 : i32, i32
  }
  func.func @transform_2(%arg0: i32) -> (i32, i32) {
    %c0_i32 = arith.constant 0 : i32
    %c0_i32_0 = arith.constant 0 : i32
    %c0_i32_1 = arith.constant 0 : i32
    return %c0_i32, %c0_i32_0 : i32, i32
  }
  func.func @transform_3(%arg0: i32) -> (i32, i32) {
    %c0_i32 = arith.constant 0 : i32
    %c0_i32_0 = arith.constant 0 : i32
    %c0_i32_1 = arith.constant 0 : i32
    return %c0_i32, %c0_i32_0 : i32, i32
  }
  func.func @transform_4(%arg0: i32) -> (i32, i32) {
    %c0_i32 = arith.constant 0 : i32
    %c0_i32_0 = arith.constant 0 : i32
    %c0_i32_1 = arith.constant 0 : i32
    return %c0_i32, %c0_i32_0 : i32, i32
  }
  func.func @transform_5(%arg0: i32) -> (i32, i32) {
    %c0_i32 = arith.constant 0 : i32
    %c0_i32_0 = arith.constant 0 : i32
    %c0_i32_1 = arith.constant 0 : i32
    return %c0_i32, %c0_i32_0 : i32, i32
  }
  func.func @transform_6(%arg0: i32) -> (i32, i32) {
    %c0_i32 = arith.constant 0 : i32
    %c0_i32_0 = arith.constant 0 : i32
    %c0_i32_1 = arith.constant 0 : i32
    return %c0_i32, %c0_i32_0 : i32, i32
  }
  func.func @transform_7(%arg0: i32) -> (i32, i32) {
    %c0_i32 = arith.constant 0 : i32
    %c0_i32_0 = arith.constant 0 : i32
    %c0_i32_1 = arith.constant 0 : i32
    return %c0_i32, %c0_i32_0 : i32, i32
  }
  func.func @transform_8(%arg0: i32) -> (i32, i32) {
    %c0_i32 = arith.constant 0 : i32
    %c0_i32_0 = arith.constant 0 : i32
    %c0_i32_1 = arith.constant 0 : i32
    return %c0_i32, %c0_i32_0 : i32, i32
  }
  func.func @transform_9(%arg0: i32) -> (i32, i32) {
    %c0_i32 = arith.constant 0 : i32
    %c0_i32_0 = arith.constant 0 : i32
    %c0_i32_1 = arith.constant 0 : i32
    return %c0_i32, %c0_i32_0 : i32, i32
  }
}

</mosaic_0001>

<bundles_post_ra>
// kernel: tpu_custom_call.1
= control target key start
LH: loop header
LB: loop body
LE: loop exit
PB: predicated region body
PF: predicated region fallthrough
CT: control target
= control target key end

     0   :  { %14 = vsyncpa [#allocation3], 0  ;;  %s3239_s0 = inlined_call_operand.hbm [shape: f32[16,32], index: 0, kind: input, shape index: {}]   ;;  %s3240_s1 = inlined_call_operand.hbm [shape: f32[16,32], index: 1, kind: input, shape index: {}]   ;;  %s3241_s2 = inlined_call_operand.hbm [shape: f32[16,32], index: 2, kind: input, shape index: {}]   ;;  %s3242_s3 = inlined_call_operand.vmem [shape: f32[16,8], index: 3, kind: input, shape index: {}]   ;;  %s3243_s4 = inlined_call_operand.vmem [shape: f32[32,32], index: 4, kind: input, shape index: {}]   ;;  %s3244_s5 = inlined_call_operand.hbm [shape: f32[32,32], index: 5, kind: input, shape index: {}]   ;;  %s3245_s6 = inlined_call_operand.hbm [shape: f32[32,32], index: 6, kind: input, shape index: {}]   ;;  %s3246_s7 = inlined_call_operand.hbm [shape: f32[32,32], index: 7, kind: input, shape index: {}]   ;;  %s3247_s8 = inlined_call_operand.vmem [shape: f32[1,32], index: 8, kind: input, shape index: {}]   ;;  %s3248_s9 = inlined_call_operand.hbm [shape: f32[16,32], index: 9, kind: output, shape index: {}]  }
   0x1   :  { %15 = vsyncpa [#allocation6], 0 }
   0x2   :  { %16 = vsyncpa [#allocation9], 0 }
   0x3   :  { %17 = vsyncpa [#allocation12], 0 }
   0x4   :  { %18 = vsyncpa [#allocation4], 0  ;;  %s2815_s30 = smov [#allocation5]   ;;  %s2816_s11 = smov [#allocation8]  }
   0x5   :  { %s36_s10 = sshll.u32 %s2815_s30, 4  ;;  %s64_s12 = sshll.u32 %s2816_s11, 4  ;;  %s37_s10 = int_to_ptr.vmem [resolvable:$true] %s36_s10  ;;  %s2879_s12 = int_to_ptr.vmem [resolvable:$true] %s64_s12 }
   0x6   :  { %s2651_s15 = scalar_lea.hbm %s3240_s1, 256 }
   0x7   :  { %p2652_p0 = scmp.ne.s32.totalorder %s3240_s1, %s2651_s15  ;;  %p2655_p1 = scmp.lt.u32.totalorder %s2651_s15, %s3240_s1 }
   0x9   :  { %p2657_p2 = pnand %p2655_p1, %p2652_p0 }
   0xb   :  { %2660 = shalt.err (!%p2657_p2)
}
   0xc   :  { %s2661_s20 = scalar_lea.vmem %s37_s10, 256  ;;  %p2666_p4 = scmp.lt.s32.totalorder %s37_s10, %s37_s10 }
   0xd   :  { %p2662_p3 = scmp.ne.s32.totalorder %s37_s10, %s2661_s20  ;;  %p2667_p5 = scmp.lt.s32.totalorder %s2661_s20, %s2661_s20 }
   0xf   :  { %p2668_p6 = por %p2667_p5, %p2666_p4 }
  0x11   :  { %p2669_p7 = pnand %p2668_p6, %p2662_p3 }
  0x13   :  { %2672 = shalt.err (!%p2669_p7)
}
  0x14   :  { %s2817_s21 = smov 128   ;;  %s2818_s22 = smov 8  }
  0x15   :  { %42 = dma.hbm_to_vmem [thread:$0]  %s3240_s1, 256, %s37_s10, [#allocation6], %s2817_s21, %s2817_s21, %s2818_s22  }
  0x16   :  { %s2673_s27 = scalar_lea.hbm %s3244_s5, 512 }
  0x17   :  { %p2674_p8 = scmp.ne.s32.totalorder %s3244_s5, %s2673_s27  ;;  %p2677_p9 = scmp.lt.u32.totalorder %s2673_s27, %s3244_s5 }
  0x19   :  { %p2679_p10 = pnand %p2677_p9, %p2674_p8 }
  0x1b   :  { %2682 = shalt.err (!%p2679_p10)
}
  0x1c   :  { %s2683_s13 = scalar_lea.vmem %s2879_s12, 512  ;;  %p2688_p12 = scmp.lt.s32.totalorder %s2879_s12, %s2879_s12 }
  0x1d   :  { %p2684_p11 = scmp.ne.s32.totalorder %s2879_s12, %s2683_s13  ;;  %p2689_p13 = scmp.lt.s32.totalorder %s2683_s13, %s2683_s13 }
  0x1f   :  { %p2690_p0 = por %p2689_p13, %p2688_p12 }
  0x21   :  { %p2691_p1 = pnand %p2690_p0, %p2684_p11 }
  0x23   :  { %2694 = shalt.err (!%p2691_p1)
}
  0x24   :  { %70 = dma.hbm_to_vmem [thread:$0]  %s3244_s5, 512, %s2879_s12, [#allocation9], %s2817_s21, %s2817_s21, %s2818_s22  }
  0x25   :  { %s2819_s14 = smov [#allocation2]   ;;  %s2820_s16 = smov [#allocation7]  }
  0x26   :  { %s24_s15 = sshll.u32 %s2819_s14, 4  ;;  %s48_s17 = sshll.u32 %s2820_s16, 4  ;;  %s25_s15 = int_to_ptr.vmem [resolvable:$true] %s24_s15  ;;  %s2916_s17 = int_to_ptr.vmem [resolvable:$true] %s48_s17 }
  0x27   :  { %s2695_s20 = scalar_lea.hbm %s3239_s0, 256 }
  0x28   :  { %p2696_p2 = scmp.ne.s32.totalorder %s3239_s0, %s2695_s20  ;;  %p2699_p3 = scmp.lt.u32.totalorder %s2695_s20, %s3239_s0 }
  0x2a   :  { %p2701_p4 = pnand %p2699_p3, %p2696_p2 }
  0x2c   :  { %2704 = shalt.err (!%p2701_p4)
}
  0x2d   :  { %s2705_s5 = scalar_lea.vmem %s25_s15, 256  ;;  %p2710_p6 = scmp.lt.s32.totalorder %s25_s15, %s25_s15 }
  0x2e   :  { %p2706_p5 = scmp.ne.s32.totalorder %s25_s15, %s2705_s5  ;;  %p2711_p7 = scmp.lt.s32.totalorder %s2705_s5, %s2705_s5 }
  0x30   :  { %p2712_p8 = por %p2711_p7, %p2710_p6 }
  0x32   :  { %p2713_p9 = pnand %p2712_p8, %p2706_p5 }
  0x34   :  { %2716 = shalt.err (!%p2713_p9)
}
  0x35   :  { %30 = dma.hbm_to_vmem [thread:$0]  %s3239_s0, 256, %s25_s15, [#allocation3], %s2817_s21, %s2817_s21, %s2818_s22  }
  0x36   :  { %s2717_s30 = scalar_lea.hbm %s3241_s2, 256 }
  0x37   :  { %p2718_p10 = scmp.ne.s32.totalorder %s3241_s2, %s2717_s30  ;;  %p2721_p11 = scmp.lt.u32.totalorder %s2717_s30, %s3241_s2 }
  0x39   :  { %p2723_p12 = pnand %p2721_p11, %p2718_p10 }
  0x3b   :  { %2726 = shalt.err (!%p2723_p12)
}
  0x3c   :  { %s2727_s14 = scalar_lea.vmem %s2916_s17, 256  ;;  %p2732_p0 = scmp.lt.s32.totalorder %s2916_s17, %s2916_s17 }
  0x3d   :  { %p2728_p13 = scmp.ne.s32.totalorder %s2916_s17, %s2727_s14  ;;  %p2733_p1 = scmp.lt.s32.totalorder %s2727_s14, %s2727_s14 }
  0x3f   :  { %p2734_p2 = por %p2733_p1, %p2732_p0 }
  0x41   :  { %p2735_p3 = pnand %p2734_p2, %p2728_p13 }
  0x43   :  { %2738 = shalt.err (!%p2735_p3)
}
  0x44   :  { %54 = dma.hbm_to_vmem [thread:$0]  %s3241_s2, 256, %s2916_s17, [#allocation6], %s2817_s21, %s2817_s21, %s2818_s22  }
  0x45   :  { %s2821_s16 = smov [#allocation10]   ;;  %s2822_s19 = smov [#allocation11]  }
  0x46   :  { %s76_s18 = sshll.u32 %s2821_s16, 4  ;;  %s88_s20 = sshll.u32 %s2822_s19, 4  ;;  %s77_s18 = int_to_ptr.vmem [resolvable:$true] %s76_s18  ;;  %s2953_s20 = int_to_ptr.vmem [resolvable:$true] %s88_s20 }
  0x47   :  { %s2739_s25 = scalar_lea.hbm %s3245_s6, 512 }
  0x48   :  { %p2740_p4 = scmp.ne.s32.totalorder %s3245_s6, %s2739_s25  ;;  %p2743_p5 = scmp.lt.u32.totalorder %s2739_s25, %s3245_s6 }
  0x4a   :  { %p2745_p6 = pnand %p2743_p5, %p2740_p4 }
  0x4c   :  { %2748 = shalt.err (!%p2745_p6)
}
  0x4d   :  { %s2749_s2 = scalar_lea.vmem %s77_s18, 512  ;;  %p2754_p8 = scmp.lt.s32.totalorder %s77_s18, %s77_s18 }
  0x4e   :  { %p2750_p7 = scmp.ne.s32.totalorder %s77_s18, %s2749_s2  ;;  %p2755_p9 = scmp.lt.s32.totalorder %s2749_s2, %s2749_s2 }
  0x50   :  { %p2756_p10 = por %p2755_p9, %p2754_p8 }
  0x52   :  { %p2757_p11 = pnand %p2756_p10, %p2750_p7 }
  0x54   :  { %2760 = shalt.err (!%p2757_p11)
}
  0x55   :  { %82 = dma.hbm_to_vmem [thread:$0]  %s3245_s6, 512, %s77_s18, [#allocation9], %s2817_s21, %s2817_s21, %s2818_s22  }
  0x56   :  { %s2761_s11 = scalar_lea.hbm %s3246_s7, 512 }
  0x57   :  { %p2762_p12 = scmp.ne.s32.totalorder %s3246_s7, %s2761_s11  ;;  %p2765_p13 = scmp.lt.u32.totalorder %s2761_s11, %s3246_s7 }
  0x59   :  { %p2767_p0 = pnand %p2765_p13, %p2762_p12 }
  0x5b   :  { %2770 = shalt.err (!%p2767_p0)
}
  0x5c   :  { %s2771_s0 = scalar_lea.vmem %s2953_s20, 512  ;;  %p2776_p2 = scmp.lt.s32.totalorder %s2953_s20, %s2953_s20 }
  0x5d   :  { %p2772_p1 = scmp.ne.s32.totalorder %s2953_s20, %s2771_s0  ;;  %p2777_p3 = scmp.lt.s32.totalorder %s2771_s0, %s2771_s0 }
  0x5f   :  { %p2778_p4 = por %p2777_p3, %p2776_p2 }
  0x61   :  { %p2779_p5 = pnand %p2778_p4, %p2772_p1 }
  0x63   :  { %2782 = shalt.err (!%p2779_p5)
}
  0x64   :  { %94 = dma.hbm_to_vmem [thread:$0]  %s3246_s7, 512, %s2953_s20, [#allocation12], %s2817_s21, %s2817_s21, %s2818_s22  }
  0x65   :  { %2805 = dma.done.wait [#allocation3], 256  }
  0x66   :  { %2806 = vsyncadd [#allocation3], 4294967040 }
  0x67   :  { %2807 = dma.done.wait [#allocation6], 512  }
  0x68   :  { %2808 = vsyncadd [#allocation6], 4294966784 }
  0x69   :  { %2809 = dma.done.wait [#allocation9], 1024  }
  0x6a   :  { %2810 = vsyncadd [#allocation9], 4294966272 }
  0x6b   :  { %2811 = dma.done.wait [#allocation12], 512  }
  0x6c   :  { %2812 = vsyncadd [#allocation12], 4294966784  ;;  %v117_v0 = vld [vmem:[%s3243_s4] sm:$0xff]  ;;  %v118_v1 = vld [vmem:[%s3243_s4 + $0x8] sm:$0xff]  ;;  %vm121_vm0 = vcmask 261120   ;;  %v2823_v24 = vmov 0.0  }
  0x6d   :  { %v205_v2 = vld [vmem:[#allocation8] sm:$0xff]  ;;  %v2581_v3 = vpack.c.bf16 %v118_v1, %v117_v0  ;;  %v206_v4 = vld [vmem:[#allocation8 + $0x8] sm:$0xff]  ;;  %v207_v9 = vld [vmem:[#allocation8 + $0x10] sm:$0xff]  ;;  %vm2824_vm1 = vmmov 0   ;;  %vm384_vm2 = vcmask 64512   ;;  %s2826_s26 = smov 112  }
  0x6e   :  { %v119_v5 = vld [vmem:[%s3243_s4 + $0x10] sm:$0xff]  ;;  %v120_v6 = vld [vmem:[%s3243_s4 + $0x18] sm:$0xff]  ;;  %v2589_v7 = vpack.c.bf16 %v206_v4, %v205_v2  ;;  %v208_v10 = vld [vmem:[#allocation8 + $0x18] sm:$0xff]  ;;  %s2825_s4 = smov 120   ;;  %s2827_s27 = smov 104  }
  0x6f   :  { %v2585_v8 = vpack.c.bf16 %v120_v6, %v119_v5  ;;  %v203_v11 = vld [vmem:[#allocation5] sm:$0xff]  ;;  %2582 = vmatprep.subr.bf16.mxu0 %v2581_v3  ;;  %v2593_v12 = vpack.c.bf16 %v208_v10, %v207_v9  ;;  %v115_v13 = vld [vmem:[#allocation2] sm:$0xff]  ;;  %v293_v15 = vld [vmem:[#allocation10 + $0x8] sm:$0xff] }
  0x70   :  { %2447 = vmatprep.mubr.msk.f32.mxu1 %vm121_vm0, %v203_v11  ;;  %v292_v14 = vld [vmem:[#allocation10] sm:$0xff]  ;;  %2590 = vmatprep.subr.bf16.mxu1 %v2589_v7  ;;  %v294_v17 = vld [vmem:[#allocation10 + $0x10] sm:$0xff]  ;;  %v295_v18 = vld [vmem:[#allocation10 + $0x18] sm:$0xff] }
  0x71   :  { %2584 = vmatpush3.bf16.msra.mxu0 %v2581_v3  ;;  %2592 = vmatpush3.bf16.msra.mxu1 %v2589_v7  ;;  %v2597_v16 = vpack.c.bf16 %v293_v15, %v292_v14  ;;  %v116_v19 = vld [vmem:[#allocation2 + $0x8] sm:$0xff]  ;;  %v204_v20 = vld [vmem:[#allocation5 + $0x8] sm:$0xff]  ;;  %v2601_v21 = vpack.c.bf16 %v295_v18, %v294_v17  ;;  %v290_v22 = vld [vmem:[#allocation7] sm:$0xff] }
  0x72   :  { %2586 = vmatprep.subr.bf16.mxu0 %v2585_v8  ;;  %2594 = vmatprep.subr.bf16.mxu1 %v2593_v12  ;;  %v291_v23 = vld [vmem:[#allocation7 + $0x8] sm:$0xff]  ;;  %v377_v33 = vld [vmem:[%s3242_s3] sm:$0xff]  ;;  %v3062_v52 = vld [vmem:[#allocation11] sm:$0xff] }
  0x73   :  { %2436 = vmatprep.mubr.msk.f32.mxu0 %vm121_vm0, %v115_v13  ;;  %vm379_vm3 = vcmp.eq.f32.partialorder %v377_v33, 0.0  ;;  %v3071_v55 = vld [vmem:[#allocation11 + $0x8] sm:$0xff] }
  0x74   :  { %v3048_v34 = vsel %vm379_vm3, -1e+30, %v2823_v24 }
  0x75   :  { %2588 = vmatpush3.bf16.msra.mxu0 %v2585_v8  ;;  %2596 = vmatpush3.bf16.msra.mxu1 %v2593_v12 }
  0x76   :  { %2598 = vmatprep.subr.bf16.mxu0 %v2597_v16  ;;  %2461 = vmatprep.subr.mxu1 %v2823_v24 }
  0x78   :  { %2437 = vmatmul.mubr.msk.f32.vlgmr.msra.gmra.mrb[0].mxu0 %vm121_vm0, %v116_v19  ;;  %2448 = vmatmul.mubr.msk.f32.vlgmr.msra.gmra.mrb[0].mxu1 %vm121_vm0, %v204_v20 }
  0x79   :  { %2600 = vmatpush3.bf16.msra.mxu0 %v2597_v16  ;;  %2458 = vmatprep.mubr.msk.f32.mxu0 %vm121_vm0, %v290_v22 }
  0x7a   :  { %2602 = vmatprep.subr.bf16.mxu0 %v2601_v21  ;;  %2463 = vmatprep.mubr.msk.f32.mxu1 %vm2824_vm1, %v2823_v24 }
  0x7d   :  { %2604 = vmatpush3.bf16.msra.mxu0 %v2601_v21  ;;  %v3106_v21 = vld [vmem:[#allocation11 + $0x10] sm:$0xff] }
  0x7e   :  { %2471 = vmatprep.subr.mxu0 %v2823_v24 }
  0x80   :  { %2459 = vmatmul.mubr.msk.f32.vlgmr.msra.gmra.mrb[2].mxu0 %vm121_vm0, %v291_v23 }
  0x81   :  { %2473 = vmatprep.mubr.msk.f32.mxu0 %vm2824_vm1, %v2823_v24 }
 0x14b   :  { %v3014_v25 = vpop.f32.mrb[0].mxu0  ;;  %v3016_v26 = vpop.f32.mrb[0].mxu1 }
 0x14c   :  { %v194_v27 = vpop.f32.mrb[1].mxu0  ;;  %v3018_v28 = vpop.f32.mrb[1].mxu1 }
 0x14d   :  { %548 = vrot.lane.b32.xlu0 %v3018_v28, %s2825_s4  ;;  %2462 = vmatpush3.xpose.msk.msra.mxu1 %vm384_vm2, %v3018_v28 }
 0x14e   :  { %2466 = vmatprep.subr.mxu1 %v2823_v24 }
 0x150   :  { %2464 = vmatmul.mubr.msk.f32.vlgmr.msra.gmra.mrb[2].mxu1 %vm384_vm2, %v194_v27 }
 0x151   :  { %546 = vrot.lane.b32.xlu0 %v194_v27, %s2825_s4  ;;  %2468 = vmatprep.mubr.msk.f32.mxu1 %vm2824_vm1, %v2823_v24 }
 0x153   :  { %v3029_v29 = vpop.f32.mrb[2].mxu0 }
 0x154   :  { %v3031_v30 = vpop.f32.mrb[3].mxu0 }
 0x155   :  { %2467 = vmatpush3.msra.mxu1 %v3031_v30  ;;  %634 = vrot.lane.b32.xlu0 %v3031_v30, %s2825_s4 }
 0x156   :  { %2476 = vmatprep.subr.mxu1 %v2823_v24 }
 0x159   :  { %861 = vrot.lane.b32.xlu0 %v3018_v28, %s2826_s26 }
 0x1bf   :  { %v549_v31 = vpop.permute.xlu0 %548 }
 0x1c0   :  { %2472 = vmatpush3.xpose.msk.msra.mxu0 %vm384_vm2, %v549_v31 }
 0x1c1   :  { %2481 = vmatprep.subr.mxu0 %v2823_v24 }
 0x1c3   :  { %v547_v32 = vpop.permute.xlu0 %546 }
 0x1c4   :  { %2474 = vmatmul.mubr.msk.f32.vlgmr.msra.gmra.mrb[4].mxu0 %vm384_vm2, %v547_v32 }
 0x1c5   :  { %2483 = vmatprep.mubr.msk.f32.mxu0 %vm2824_vm1, %v2823_v24  ;;  %2482 = vmatpush3.msra.mxu0 %v3071_v55 }
 0x1c6   :  { %2491 = vmatprep.subr.mxu0 %v2823_v24 }
 0x1c7   :  { %v635_v47 = vpop.permute.xlu0 %634 }
 0x1cb   :  { %v862_v56 = vpop.permute.xlu0 %861 }
 0x223   :  { %v457_v35 = vpop.f32.mrb[2].mxu1 }
 0x224   :  { %v458_v36 = vadd.f32 %v457_v35, %v3048_v34  ;;  %v2465_v37 = vpop.f32.mrb[3].mxu1 }
 0x226   :  { %v461_v38 = vsel %vm384_vm2, %v458_v36, -inf }
 0x227   :  { %462 = vmax.xlane.f32.xlu1 %v461_v38 }
 0x297   :  { %v620_v39 = vpop.f32.mrb[4].mxu0 }
 0x298   :  { %v621_v40 = vadd.f32 %v620_v39, %v3048_v34  ;;  %v2475_v41 = vpop.f32.mrb[5].mxu0 }
 0x29a   :  { %v624_v42 = vsel %vm384_vm2, %v621_v40, -inf }
 0x29b   :  { %625 = vmax.xlane.f32.xlu1 %v624_v42 }
 0x2b4   :  { %v463_v43 = vpop.xlane.xlu1 %462 }
 0x2b5   :  { %v464_v44 = vsub.f32 %v458_v36, %v463_v43 }
 0x2b7   :  { %v465_v45 = vmul.f32 1.442695, %v464_v44 }
 0x2b9   :  { %2619 = vpow2.f32 %v465_v45 }
 0x2c3   :  { %v2620_v46 = vpop.eup %2619 }
 0x2c4   :  { %2469 = vmatmul.mubr.msk.f32.vlgmr.msra.gmra.mrb[4].mxu1 %vm384_vm2, %v2620_v46  ;;  %v467_v48 = vsel %vm384_vm2, %v2620_v46, 0.0  ;;  %v3137_v46 = vld [vmem:[#allocation11 + $0x18] sm:$0xff] }
 0x2c5   :  { %468 = vadd.xlane.f32.xlu0 %v467_v48  ;;  %2477 = vmatpush3.msra.mxu1 %v635_v47  ;;  %v378_v48 = vld [vmem:[%s3242_s3 + $0x8] sm:$0xff] }
 0x2c6   :  { %2478 = vmatprep.mubr.msk.f32.mxu1 %vm2824_vm1, %v2823_v24  ;;  %2486 = vmatprep.subr.mxu1 %v2823_v24  ;;  %vm380_vm4 = vcmp.eq.f32.partialorder %v378_v48, 0.0 }
 0x2db   :  { %946 = vrot.lane.b32.xlu0 %v3031_v30, %s2826_s26 }
 0x2df   :  { %1099 = vrot.lane.b32.xlu0 %v194_v27, %s2827_s27 }
 0x328   :  { %v626_v49 = vpop.xlane.xlu1 %625 }
 0x329   :  { %v627_v50 = vsub.f32 %v621_v40, %v626_v49 }
 0x32b   :  { %v628_v51 = vmul.f32 1.442695, %v627_v50 }
 0x32d   :  { %2621 = vpow2.f32 %v628_v51 }
 0x337   :  { %v2622_v53 = vpop.eup %2621 }
 0x338   :  { %2479 = vmatmul.mubr.msk.f32.vlgmr.msra.gmra.mrb[6].mxu1 %vm384_vm2, %v2622_v53  ;;  %v630_v54 = vsel %vm384_vm2, %v2622_v53, 0.0 }
 0x339   :  { %631 = vadd.xlane.f32.xlu1 %v630_v54  ;;  %2487 = vmatpush3.msra.mxu1 %v3062_v52  ;;  %v3145_v54 = vsel %vm380_vm4, -1e+30, %v2823_v24 }
 0x33a   :  { %2488 = vmatprep.mubr.msk.f32.mxu1 %vm2824_vm1, %v2823_v24  ;;  %2496 = vmatprep.subr.mxu1 %v2823_v24 }
 0x34a   :  { %859 = vrot.lane.b32.xlu1 %v194_v27, %s2826_s26 }
 0x352   :  { %v469_v57 = vpop.xlane.xlu0 %468 }
 0x353   :  { %2623 = vrcp.f32 %v469_v57 }
 0x356   :  { %v947_v62 = vpop.permute.xlu0 %946 }
 0x35a   :  { %v1100_v20 = vpop.permute.xlu0 %1099 }
 0x35d   :  { %v2624_v58 = vpop.eup %2623 }
 0x397   :  { %v539_v59 = vpop.f32.mrb[4].mxu1 }
 0x398   :  { %v544_v60 = vmul.f32 %v2624_v58, %v539_v59  ;;  %v2470_v61 = vpop.f32.mrb[5].mxu1 }
 0x39a   :  { %2489 = vmatmul.mubr.msk.f32.vlgmr.msra.gmra.mrb[8].mxu1 %vm384_vm2, %v544_v60 }
 0x39b   :  { %2497 = vmatpush3.msra.mxu1 %v947_v62  ;;  %2498 = vmatprep.mubr.msk.f32.mxu1 %vm2824_vm1, %v2823_v24 }
 0x39c   :  { %2506 = vmatprep.subr.mxu1 %v2823_v24 }
 0x3c6   :  { %v632_v63 = vpop.xlane.xlu1 %631 }
 0x3c7   :  { %2625 = vrcp.f32 %v632_v63 }
 0x3ca   :  { %v860_v4 = vpop.permute.xlu1 %859 }
 0x3d1   :  { %v2626_v0 = vpop.eup %2625 }
 0x40b   :  { %v706_v1 = vpop.f32.mrb[6].mxu1 }
 0x40c   :  { %v711_v2 = vmul.f32 %v2626_v0, %v706_v1  ;;  %v2480_v3 = vpop.f32.mrb[7].mxu1 }
 0x40e   :  { %2484 = vmatmul.mubr.msk.f32.vlgmr.msra.gmra.mrb[6].mxu0 %vm384_vm2, %v711_v2 }
 0x40f   :  { %2492 = vmatpush3.xpose.msk.msra.mxu0 %vm384_vm2, %v862_v56  ;;  %2493 = vmatprep.mubr.msk.f32.mxu0 %vm2824_vm1, %v2823_v24 }
 0x410   :  { %2501 = vmatprep.subr.mxu0 %v2823_v24 }
 0x412   :  { %2494 = vmatmul.mubr.msk.f32.vlgmr.msra.gmra.mrb[8].mxu0 %vm384_vm2, %v860_v4 }
 0x413   :  { %2503 = vmatprep.mubr.msk.f32.mxu0 %vm2824_vm1, %v2823_v24  ;;  %2502 = vmatpush3.msra.mxu0 %v3106_v21 }
 0x414   :  { %2511 = vmatprep.subr.mxu0 %v2823_v24 }
 0x46d   :  { %v855_v5 = vpop.f32.mrb[8].mxu1 }
 0x46e   :  { %v2490_v6 = vpop.f32.mrb[9].mxu1 }
 0x4e1   :  { %v782_v7 = vpop.f32.mrb[6].mxu0 }
 0x4e2   :  { %v3087_v8 = vadd.f32 %v855_v5, %v782_v7  ;;  %v2485_v9 = vpop.f32.mrb[7].mxu0 }
 0x4e5   :  { %v933_v10 = vpop.f32.mrb[8].mxu0 }
 0x4e6   :  { %v934_v11 = vadd.f32 %v933_v10, %v3048_v34  ;;  %v2495_v12 = vpop.f32.mrb[9].mxu0  ;;  %v3180_v10 = vld [vmem:[%s3247_s8] ss:$0 sm:$0xff]  ;;  %s2828_s8 = smov [#allocation13]  }
 0x4e7   :  { %s2308_s29 = sshll.u32 %s2828_s8, 4  ;;  %s2309_s29 = int_to_ptr.vmem [resolvable:$true] %s2308_s29 }
 0x4e8   :  { %v937_v13 = vsel %vm384_vm2, %v934_v11, -inf  ;;  %s2783_s30 = scalar_lea.vmem %s2309_s29, 256  ;;  %p2788_p7 = scmp.lt.s32.totalorder %s2309_s29, %s2309_s29 }
 0x4e9   :  { %938 = vmax.xlane.f32.xlu1 %v937_v13  ;;  %p2784_p6 = scmp.ne.s32.totalorder %s2309_s29, %s2783_s30  ;;  %p2789_p8 = scmp.lt.s32.totalorder %s2783_s30, %s2783_s30 }
 0x4eb   :  { %p2790_p9 = por %p2789_p8, %p2788_p7 }
 0x4ed   :  { %p2791_p10 = pnand %p2790_p9, %p2784_p6 }
 0x4fa   :  { %1101 = vrot.lane.b32.xlu1 %v3018_v28, %s2827_s27 }
 0x576   :  { %v939_v14 = vpop.xlane.xlu1 %938 }
 0x577   :  { %v940_v15 = vsub.f32 %v934_v11, %v939_v14 }
 0x579   :  { %v941_v16 = vmul.f32 1.442695, %v940_v15 }
 0x57a   :  { %v1102_v18 = vpop.permute.xlu1 %1101 }
 0x57b   :  { %2627 = vpow2.f32 %v941_v16 }
 0x585   :  { %v2628_v17 = vpop.eup %2627 }
 0x586   :  { %2499 = vmatmul.mubr.msk.f32.vlgmr.msra.gmra.mrb[10].mxu1 %vm384_vm2, %v2628_v17  ;;  %v943_v19 = vsel %vm384_vm2, %v2628_v17, 0.0 }
 0x587   :  { %2507 = vmatpush3.xpose.msk.msra.mxu1 %vm384_vm2, %v1102_v18  ;;  %944 = vadd.xlane.f32.xlu0 %v943_v19 }
 0x588   :  { %2508 = vmatprep.mubr.msk.f32.mxu1 %vm2824_vm1, %v2823_v24  ;;  %2516 = vmatprep.subr.mxu1 %v2823_v24 }
 0x58a   :  { %2509 = vmatmul.mubr.msk.f32.vlgmr.msra.gmra.mrb[12].mxu1 %vm384_vm2, %v1100_v20 }
 0x58b   :  { %2518 = vmatprep.mubr.msk.f32.mxu1 %vm2824_vm1, %v2823_v24  ;;  %2517 = vmatpush3.msra.mxu1 %v3137_v46 }
 0x58c   :  { %2526 = vmatprep.subr.mxu1 %v2823_v24 }
 0x59d   :  { %1186 = vrot.lane.b32.xlu0 %v3031_v30, %s2827_s27 }
 0x5a1   :  { %1508 = vrot.lane.b32.xlu0 %v3014_v25, %s2825_s4 }
 0x614   :  { %v945_v22 = vpop.xlane.xlu0 %944 }
 0x615   :  { %2629 = vrcp.f32 %v945_v22 }
 0x618   :  { %v1187_v32 = vpop.permute.xlu0 %1186 }
 0x61c   :  { %v1509_v42 = vpop.permute.xlu0 %1508 }
 0x61f   :  { %v2630_v23 = vpop.eup %2629 }
 0x659   :  { %v1018_v27 = vpop.f32.mrb[10].mxu1 }
 0x65a   :  { %v1023_v28 = vmul.f32 %v2630_v23, %v1018_v27  ;;  %v2500_v31 = vpop.f32.mrb[11].mxu1 }
 0x65c   :  { %2504 = vmatmul.mubr.msk.f32.vlgmr.msra.gmra.mrb[10].mxu0 %vm384_vm2, %v1023_v28 }
 0x65d   :  { %2512 = vmatpush3.msra.mxu0 %v1187_v32  ;;  %v1173_v30 = vpop.f32.mrb[12].mxu1  ;;  %2513 = vmatprep.mubr.msk.f32.mxu0 %vm2824_vm1, %v2823_v24 }
 0x65e   :  { %v1174_v33 = vadd.f32 %v1173_v30, %v3048_v34  ;;  %v2510_v35 = vpop.f32.mrb[13].mxu1  ;;  %2521 = vmatprep.subr.mxu0 %v2823_v24 }
 0x660   :  { %v1177_v36 = vsel %vm384_vm2, %v1174_v33, -inf }
 0x661   :  { %1178 = vmax.xlane.f32.xlu1 %v1177_v36 }
 0x672   :  { %1510 = vrot.lane.b32.xlu1 %v3016_v26, %s2825_s4 }
 0x6ee   :  { %v1179_v37 = vpop.xlane.xlu1 %1178 }
 0x6ef   :  { %v1180_v38 = vsub.f32 %v1174_v33, %v1179_v37 }
 0x6f1   :  { %v1181_v39 = vmul.f32 1.442695, %v1180_v38 }
 0x6f2   :  { %v1511_v34 = vpop.permute.xlu1 %1510 }
 0x6f3   :  { %2631 = vpow2.f32 %v1181_v39 }
 0x6fd   :  { %v2632_v40 = vpop.eup %2631 }
 0x6fe   :  { %2514 = vmatmul.mubr.msk.f32.vlgmr.msra.gmra.mrb[12].mxu0 %vm384_vm2, %v2632_v40  ;;  %v1183_v41 = vsel %vm384_vm2, %v2632_v40, 0.0 }
 0x6ff   :  { %2522 = vmatpush3.xpose.msk.msra.mxu0 %vm384_vm2, %v3016_v26  ;;  %1184 = vadd.xlane.f32.xlu0 %v1183_v41 }
 0x700   :  { %2523 = vmatprep.mubr.msk.f32.mxu0 %vm2824_vm1, %v2823_v24  ;;  %2531 = vmatprep.subr.mxu0 %v2823_v24 }
 0x702   :  { %2524 = vmatmul.mubr.msk.f32.vlgmr.msra.gmra.mrb[14].mxu0 %vm384_vm2, %v3014_v25 }
 0x703   :  { %2532 = vmatpush3.xpose.msk.msra.mxu0 %vm384_vm2, %v1511_v34  ;;  %2533 = vmatprep.mubr.msk.f32.mxu0 %vm2824_vm1, %v2823_v24 }
 0x704   :  { %2541 = vmatprep.subr.mxu0 %v2823_v24 }
 0x706   :  { %2534 = vmatmul.mubr.msk.f32.vlgmr.msra.gmra.mrb[16].mxu0 %vm384_vm2, %v1509_v42 }
 0x707   :  { %2542 = vmatpush3.msra.mxu0 %v3071_v55  ;;  %2543 = vmatprep.mubr.msk.f32.mxu0 %vm2824_vm1, %v2823_v24 }
 0x708   :  { %2551 = vmatprep.subr.mxu0 %v2823_v24 }
 0x72f   :  { %v1094_v43 = vpop.f32.mrb[10].mxu0 }
 0x730   :  { %v1098_v44 = vadd.f32 %v1094_v43, %v3087_v8  ;;  %v2505_v45 = vpop.f32.mrb[11].mxu0 }
 0x78c   :  { %v1185_v47 = vpop.xlane.xlu0 %1184 }
 0x78d   :  { %2633 = vrcp.f32 %v1185_v47 }
 0x797   :  { %v2634_v49 = vpop.eup %2633 }
 0x7d1   :  { %v1258_v50 = vpop.f32.mrb[12].mxu0 }
 0x7d2   :  { %v1263_v51 = vmul.f32 %v2634_v49, %v1258_v50  ;;  %v2515_v53 = vpop.f32.mrb[13].mxu0 }
 0x7d4   :  { %2519 = vmatmul.mubr.msk.f32.vlgmr.msra.gmra.mrb[14].mxu1 %vm384_vm2, %v1263_v51 }
 0x7d5   :  { %2527 = vmatpush3.msra.mxu1 %v3029_v29  ;;  %v1419_v55 = vpop.f32.mrb[14].mxu0  ;;  %2528 = vmatprep.mubr.msk.f32.mxu1 %vm2824_vm1, %v2823_v24 }
 0x7d6   :  { %v1420_v56 = vadd.f32 %v1419_v55, %v3145_v54  ;;  %v2525_v57 = vpop.f32.mrb[15].mxu0  ;;  %2536 = vmatprep.subr.mxu1 %v2823_v24 }
 0x7d8   :  { %v1423_v58 = vsel %vm384_vm2, %v1420_v56, -inf }
 0x7d9   :  { %1424 = vmax.xlane.f32.xlu1 %v1423_v58  ;;  %v1582_v59 = vpop.f32.mrb[16].mxu0 }
 0x7da   :  { %v1583_v60 = vadd.f32 %v1582_v59, %v3145_v54  ;;  %v2535_v61 = vpop.f32.mrb[17].mxu0 }
 0x7dc   :  { %v1586_v62 = vsel %vm384_vm2, %v1583_v60, -inf }
 0x7dd   :  { %1587 = vmax.xlane.f32.xlu0 %v1586_v62 }
 0x7f3   :  { %1596 = vrot.lane.b32.xlu0 %v3029_v29, %s2825_s4 }
 0x7f7   :  { %1821 = vrot.lane.b32.xlu0 %v3014_v25, %s2826_s26 }
 0x866   :  { %v1425_v63 = vpop.xlane.xlu1 %1424 }
 0x867   :  { %v1426_v0 = vsub.f32 %v1420_v56, %v1425_v63 }
 0x869   :  { %v1427_v1 = vmul.f32 1.442695, %v1426_v0 }
 0x86a   :  { %v1588_v2 = vpop.xlane.xlu0 %1587 }
 0x86b   :  { %2635 = vpow2.f32 %v1427_v1  ;;  %v1589_v3 = vsub.f32 %v1583_v60, %v1588_v2 }
 0x86d   :  { %v1590_v4 = vmul.f32 1.442695, %v1589_v3 }
 0x86e   :  { %v1597_v6 = vpop.permute.xlu0 %1596 }
 0x86f   :  { %2637 = vpow2.f32 %v1590_v4 }
 0x872   :  { %v1822_v14 = vpop.permute.xlu0 %1821 }
 0x875   :  { %v2636_v5 = vpop.eup %2635 }
 0x876   :  { %2529 = vmatmul.mubr.msk.f32.vlgmr.msra.gmra.mrb[16].mxu1 %vm384_vm2, %v2636_v5  ;;  %v1429_v7 = vsel %vm384_vm2, %v2636_v5, 0.0 }
 0x877   :  { %2537 = vmatpush3.msra.mxu1 %v1597_v6  ;;  %1430 = vadd.xlane.f32.xlu0 %v1429_v7 }
 0x878   :  { %2538 = vmatprep.mubr.msk.f32.mxu1 %vm2824_vm1, %v2823_v24  ;;  %2546 = vmatprep.subr.mxu1 %v2823_v24 }
 0x879   :  { %v2638_v8 = vpop.eup %2637 }
 0x87a   :  { %2539 = vmatmul.mubr.msk.f32.vlgmr.msra.gmra.mrb[18].mxu1 %vm384_vm2, %v2638_v8  ;;  %v1592_v9 = vsel %vm384_vm2, %v2638_v8, 0.0 }
 0x87b   :  { %1593 = vadd.xlane.f32.xlu1 %v1592_v9  ;;  %2547 = vmatpush3.msra.mxu1 %v3062_v52 }
 0x87c   :  { %2548 = vmatprep.mubr.msk.f32.mxu1 %vm2824_vm1, %v2823_v24  ;;  %2556 = vmatprep.subr.mxu1 %v2823_v24 }
 0x88c   :  { %1823 = vrot.lane.b32.xlu1 %v3016_v26, %s2826_s26 }
 0x88d   :  { %1908 = vrot.lane.b32.xlu0 %v3029_v29, %s2826_s26 }
 0x891   :  { %2061 = vrot.lane.b32.xlu0 %v3014_v25, %s2827_s27 }
 0x8a7   :  { %v1334_v52 = vpop.f32.mrb[14].mxu1 }
 0x8a8   :  { %v1338_v11 = vadd.f32 %v1334_v52, %v1098_v44  ;;  %v2520_v12 = vpop.f32.mrb[15].mxu1 }
 0x8aa   :  { %v1345_v13 = vadd.f32 %v3180_v10, %v1338_v11 }
 0x8ac   :  { %1346 = vst.msk [vmem:[#allocation13] sm:$0xff] %vm121_vm0, %v1345_v13 }
 0x904   :  { %v1431_v15 = vpop.xlane.xlu0 %1430 }
 0x905   :  { %2639 = vrcp.f32 %v1431_v15 }
 0x908   :  { %v1594_v16 = vpop.xlane.xlu1 %1593  ;;  %v1909_v20 = vpop.permute.xlu0 %1908 }
 0x909   :  { %2641 = vrcp.f32 %v1594_v16 }
 0x90c   :  { %v1824_v31 = vpop.permute.xlu1 %1823  ;;  %v2062_v45 = vpop.permute.xlu0 %2061 }
 0x90f   :  { %v2640_v17 = vpop.eup %2639 }
 0x913   :  { %v2642_v22 = vpop.eup %2641 }
 0x949   :  { %v1501_v18 = vpop.f32.mrb[16].mxu1 }
 0x94a   :  { %v1506_v25 = vmul.f32 %v2640_v17, %v1501_v18  ;;  %v2530_v19 = vpop.f32.mrb[17].mxu1 }
 0x94c   :  { %2549 = vmatmul.mubr.msk.f32.vlgmr.msra.gmra.mrb[20].mxu1 %vm384_vm2, %v1506_v25 }
 0x94d   :  { %2557 = vmatpush3.msra.mxu1 %v1909_v20  ;;  %v1668_v23 = vpop.f32.mrb[18].mxu1  ;;  %2558 = vmatprep.mubr.msk.f32.mxu1 %vm2824_vm1, %v2823_v24 }
 0x94e   :  { %v1673_v27 = vmul.f32 %v2642_v22, %v1668_v23  ;;  %v2540_v28 = vpop.f32.mrb[19].mxu1  ;;  %2566 = vmatprep.subr.mxu1 %v2823_v24 }
 0x950   :  { %2544 = vmatmul.mubr.msk.f32.vlgmr.msra.gmra.mrb[18].mxu0 %vm384_vm2, %v1673_v27 }
 0x951   :  { %2552 = vmatpush3.xpose.msk.msra.mxu0 %vm384_vm2, %v1824_v31  ;;  %2553 = vmatprep.mubr.msk.f32.mxu0 %vm2824_vm1, %v2823_v24 }
 0x952   :  { %2561 = vmatprep.subr.mxu0 %v2823_v24 }
 0x954   :  { %2554 = vmatmul.mubr.msk.f32.vlgmr.msra.gmra.mrb[20].mxu0 %vm384_vm2, %v1822_v14 }
 0x955   :  { %2562 = vmatpush3.msra.mxu0 %v3106_v21  ;;  %2563 = vmatprep.mubr.msk.f32.mxu0 %vm2824_vm1, %v2823_v24 }
 0x956   :  { %2571 = vmatprep.subr.mxu0 %v2823_v24 }
 0xa1f   :  { %v1817_v32 = vpop.f32.mrb[20].mxu1 }
 0xa20   :  { %v2550_v30 = vpop.f32.mrb[21].mxu1 }
 0xa23   :  { %v1744_v33 = vpop.f32.mrb[18].mxu0 }
 0xa24   :  { %v1818_v35 = vadd.f32 %v1817_v32, %v1744_v33  ;;  %v2545_v36 = vpop.f32.mrb[19].mxu0 }
 0xa27   :  { %v1895_v37 = vpop.f32.mrb[20].mxu0 }
 0xa28   :  { %v1896_v38 = vadd.f32 %v1895_v37, %v3145_v54  ;;  %v2555_v39 = vpop.f32.mrb[21].mxu0 }
 0xa2a   :  { %v1899_v40 = vsel %vm384_vm2, %v1896_v38, -inf }
 0xa2b   :  { %1900 = vmax.xlane.f32.xlu1 %v1899_v40 }
 0xa3c   :  { %2063 = vrot.lane.b32.xlu1 %v3016_v26, %s2827_s27 }
 0xab8   :  { %v1901_v21 = vpop.xlane.xlu1 %1900 }
 0xab9   :  { %v1902_v41 = vsub.f32 %v1896_v38, %v1901_v21 }
 0xabb   :  { %v1903_v34 = vmul.f32 1.442695, %v1902_v41 }
 0xabc   :  { %v2064_v43 = vpop.permute.xlu1 %2063 }
 0xabd   :  { %2643 = vpow2.f32 %v1903_v34 }
 0xac7   :  { %v2644_v42 = vpop.eup %2643 }
 0xac8   :  { %2559 = vmatmul.mubr.msk.f32.vlgmr.msra.gmra.mrb[22].mxu1 %vm384_vm2, %v2644_v42  ;;  %v1905_v44 = vsel %vm384_vm2, %v2644_v42, 0.0 }
 0xac9   :  { %2567 = vmatpush3.xpose.msk.msra.mxu1 %vm384_vm2, %v2064_v43  ;;  %1906 = vadd.xlane.f32.xlu1 %v1905_v44 }
 0xaca   :  { %2568 = vmatprep.mubr.msk.f32.mxu1 %vm2824_vm1, %v2823_v24  ;;  %2576 = vmatprep.subr.mxu1 %v2823_v24 }
 0xacc   :  { %2569 = vmatmul.mubr.msk.f32.vlgmr.msra.gmra.mrb[24].mxu1 %vm384_vm2, %v2062_v45 }
 0xacd   :  { %2577 = vmatpush3.msra.mxu1 %v3137_v46  ;;  %2578 = vmatprep.mubr.msk.f32.mxu1 %vm2824_vm1, %v2823_v24 }
 0xb56   :  { %v1907_v26 = vpop.xlane.xlu1 %1906 }
 0xb57   :  { %2645 = vrcp.f32 %v1907_v26 }
 0xb61   :  { %v2646_v47 = vpop.eup %2645 }
 0xb9b   :  { %v1980_v48 = vpop.f32.mrb[22].mxu1 }
 0xb9c   :  { %v1985_v49 = vmul.f32 %v2646_v47, %v1980_v48  ;;  %v2560_v50 = vpop.f32.mrb[23].mxu1 }
 0xb9e   :  { %2564 = vmatmul.mubr.msk.f32.vlgmr.msra.gmra.mrb[22].mxu0 %vm384_vm2, %v1985_v49 }
 0xb9f   :  { %v2135_v51 = vpop.f32.mrb[24].mxu1  ;;  %2573 = vmatprep.mubr.msk.f32.mxu0 %vm2824_vm1, %v2823_v24 }
 0xba0   :  { %v2136_v53 = vadd.f32 %v2135_v51, %v3145_v54  ;;  %v2570_v55 = vpop.f32.mrb[25].mxu1 }
 0xba2   :  { %v2139_v46 = vsel %vm384_vm2, %v2136_v53, -inf }
 0xba3   :  { %2140 = vmax.xlane.f32.xlu0 %v2139_v46 }
 0xbb9   :  { %2148 = vrot.lane.b32.xlu0 %v3029_v29, %s2827_s27 }
 0xc30   :  { %v2141_v56 = vpop.xlane.xlu0 %2140 }
 0xc31   :  { %v2142_v57 = vsub.f32 %v2136_v53, %v2141_v56 }
 0xc33   :  { %v2143_v58 = vmul.f32 1.442695, %v2142_v57 }
 0xc34   :  { %v2149_v59 = vpop.permute.xlu0 %2148 }
 0xc35   :  { %2647 = vpow2.f32 %v2143_v58  ;;  %2572 = vmatpush3.msra.mxu0 %v2149_v59 }
 0xc3f   :  { %v2648_v60 = vpop.eup %2647 }
 0xc40   :  { %2574 = vmatmul.mubr.msk.f32.vlgmr.msra.gmra.mrb[24].mxu0 %vm384_vm2, %v2648_v60  ;;  %v2145_v24 = vsel %vm384_vm2, %v2648_v60, 0.0 }
 0xc41   :  { %2146 = vadd.xlane.f32.xlu1 %v2145_v24 }
 0xc71   :  { %v2056_v54 = vpop.f32.mrb[22].mxu0 }
 0xc72   :  { %v2060_v61 = vadd.f32 %v2056_v54, %v1818_v35  ;;  %v2565_v62 = vpop.f32.mrb[23].mxu0 }
 0xcce   :  { %v2147_v63 = vpop.xlane.xlu1 %2146 }
 0xccf   :  { %2649 = vrcp.f32 %v2147_v63 }
 0xcd9   :  { %v2650_v0 = vpop.eup %2649 }
 0xd13   :  { %v2220_v1 = vpop.f32.mrb[24].mxu0 }
 0xd14   :  { %v2225_v29 = vmul.f32 %v2650_v0, %v2220_v1  ;;  %v2575_v2 = vpop.f32.mrb[25].mxu0 }
 0xd16   :  { %2579 = vmatmul.mubr.msk.f32.vlgmr.msra.gmra.mrb[26].mxu1 %vm384_vm2, %v2225_v29 }
 0xde9   :  { %v2296_v3 = vpop.f32.mrb[26].mxu1 }
 0xdea   :  { %v2300_v4 = vadd.f32 %v2296_v3, %v2060_v61  ;;  %v2580_v5 = vpop.f32.mrb[27].mxu1 }
 0xdec   :  { %v2301_v6 = vadd.f32 %v3180_v10, %v2300_v4 }
 0xdee   :  { %2302 = vst.msk [vmem:[#allocation13 + $0x8] sm:$0xff] %vm121_vm0, %v2301_v6 }
 0xdef   :  { %2794 = shalt.err (!%p2791_p10)
}
 0xdf0   :  { %s2795_s1 = scalar_lea.hbm %s3248_s9, 256 }
 0xdf1   :  { %p2796_p11 = scmp.ne.s32.totalorder %s3248_s9, %s2795_s1  ;;  %p2799_p12 = scmp.lt.u32.totalorder %s2795_s1, %s3248_s9 }
 0xdf3   :  { %p2801_p13 = pnand %p2799_p12, %p2796_p11 }
 0xdf5   :  { %2804 = shalt.err (!%p2801_p13)
}
 0xdf6   :  { %2314 = dma.vmem_to_hbm [thread:$0]  %s2309_s29, 256, %s3248_s9, [#allocation4], %s2817_s21, %s2817_s21, %s2818_s22  }
 0xdf7   :  { %2813 = dma.done.wait [#allocation4], 256  }
 0xdf8   :  { %2814 = vsyncadd [#allocation4], 4294967040 }
 0xdf9   :  { %2318 = vsyncpa [#allocation3], 1 }
 0xdfa   :  { %2319 = vsyncpa [#allocation6], 1 }
 0xdfb   :  { %2320 = vsyncpa [#allocation9], 1 }
 0xdfc   :  { %2321 = vsyncpa [#allocation12], 1 }
 0xdfd   :  { %2322 = vsyncpa [#allocation4], 1 }

</bundles_post_ra>
